<compile_context>
chip_gen: v6e
topology: v6e:2x2x1
jax: 0.10.0
libtpu: 0.0.40
codegen_flags: <defaults>
</compile_context>

<pallas_src>
import functools
import math

import jax
import jax.numpy as jnp
from jax import lax
from jax.experimental import pallas as pl
from jax.experimental.pallas import tpu as pltpu

N_INPUTS = 3
DIM_HIDDEN = 128
N_ENC_LAYERS = 4          # module default is 50; kept small for the demo
NUM_CLASSES = 40          # dec final Linear is hard-coded to 40 in the module
LANE = 128                # lane-dense padded logit width


# ---------------------------------------------------------------- kernel -----

def deepsets_kernel(x_ref,                       # (TB*Np, Cp) f32 flattened points
                    w1_ref, b1_ref,              # enc0 fc : (Cp, H) bf16, (1, H) f32
                    w2_ref, b2_ref,              # enc0 fc2: (H, H) bf16, (1, H) f32
                    wm_ref, bm_ref,              # mid stack: (Lm, H, H) bf16, (Lm, 1, H) f32
                    wo_ref, bo_ref,              # enc_out : (H, H) bf16, (1, H) f32
                    wd1_ref, bd1_ref,            # dec fc1 : (H, H) bf16, (1, H) f32
                    wd2_ref, bd2_ref,            # dec fc2 (lane-padded): (H, LANE) bf16, (1, LANE) f32
                    o_ref,                       # (TB, LANE) f32 padded logits
                    *, tb, n_pad, n_valid):
    H = w2_ref.shape[1]

    # ---- enc[0] MLPTanh: tanh -> fc -> tanh -> fc2; no residual (C != H) ----
    h = jnp.tanh(x_ref[...])                                         # (TB*Np, Cp) f32
    y = (jnp.dot(h.astype(jnp.bfloat16), w1_ref[...],
                 preferred_element_type=jnp.float32) + b1_ref[...])  # K=8 MXU push
    h = jnp.tanh(y)
    h = (jnp.dot(h.astype(jnp.bfloat16), w2_ref[...],
                 preferred_element_type=jnp.float32) + b2_ref[...])  # (TB*Np, H) f32

    # ---- enc[1..L-1] residual MLPs (pipeline='ours'); last layer (no ReLU) peeled ----
    n_mid = wm_ref.shape[0]

    def body(j, h_carry):
        yj = (jnp.dot(h_carry.astype(jnp.bfloat16), wm_ref[j],
                      preferred_element_type=jnp.float32) + bm_ref[j])
        return h_carry + jnp.maximum(yj, 0.0)                        # connect('resid')

    h = lax.fori_loop(0, n_mid - 1, body, h)
    y = (jnp.dot(h.astype(jnp.bfloat16), wm_ref[n_mid - 1],
                 preferred_element_type=jnp.float32) + bm_ref[n_mid - 1])
    h = h + y                                                        # no activation

    # ---- final encoder nn.Linear(H, H) ----
    h = (jnp.dot(h.astype(jnp.bfloat16), wo_ref[...],
                 preferred_element_type=jnp.float32) + bo_ref[...])

    # ---- mean over the set dim, TB sets at once (tile-aligned reshape) ----
    h = h.reshape(tb, n_pad, H)
    if n_pad == n_valid:
        m = jnp.mean(h, axis=1)                                      # (TB, H)
    else:
        mask = lax.broadcasted_iota(jnp.int32, (1, n_pad, 1), 1) < n_valid
        m = jnp.sum(jnp.where(mask, h, 0.0), axis=1) * (1.0 / n_valid)

    # ---- decoder on the full (TB, H) tile: Dropout(id)->Linear->Tanh->Dropout(id)->Linear ----
    d = jnp.tanh(jnp.dot(m.astype(jnp.bfloat16), wd1_ref[...],
                         preferred_element_type=jnp.float32) + bd1_ref[...])
    logit = (jnp.dot(d.astype(jnp.bfloat16), wd2_ref[...],
                     preferred_element_type=jnp.float32) + bd2_ref[...])  # (TB, LANE)
    o_ref[...] = logit.astype(o_ref.dtype)


# --------------------------------------------------------------- plumbing ----

def _zero_map(ndim):
    return lambda b: (0,) * ndim


def _choose_batch_tile(B, N):
    # Target flattened matmul M = TB*N ~ 256 rows (256-aligned for v6e/v7x MXU),
    # but keep >= 2 grid steps whenever B >= 2 so both v7x TensorCores get work.
    tb = max(1, 256 // max(N, 1))
    tb = min(tb, B)
    if -(-B // tb) < 2 and B >= 2:
        tb = -(-B // 2)
    return tb


def init_linear(key, fan_in, fan_out):
    # PyTorch nn.Linear default init: U(-1/sqrt(fan_in), 1/sqrt(fan_in))
    k1, k2 = jax.random.split(key)
    bound = 1.0 / math.sqrt(fan_in)
    w = jax.random.uniform(k1, (fan_in, fan_out), jnp.float32, -bound, bound)
    b = jax.random.uniform(k2, (1, fan_out), jnp.float32, -bound, bound)
    return w, b


def init_params(key):
    keys = jax.random.split(key, N_ENC_LAYERS + 4)
    params = {}
    w1, b1 = init_linear(keys[0], N_INPUTS, DIM_HIDDEN)
    w2, b2 = init_linear(keys[1], DIM_HIDDEN, DIM_HIDDEN)
    params["enc0"] = (w1, b1, w2, b2)
    params["enc_mid"] = [init_linear(keys[1 + j], DIM_HIDDEN, DIM_HIDDEN)
                         for j in range(1, N_ENC_LAYERS)]
    params["enc_out"] = init_linear(keys[N_ENC_LAYERS + 1], DIM_HIDDEN, DIM_HIDDEN)
    w1d, b1d = init_linear(keys[N_ENC_LAYERS + 2], DIM_HIDDEN, DIM_HIDDEN)
    w2d, b2d = init_linear(keys[N_ENC_LAYERS + 3], DIM_HIDDEN, NUM_CLASSES)
    params["dec"] = (w1d, b1d, w2d, b2d)
    return params


@jax.jit
def deepsets_tanh_forward(pc, params):
    B, N, C = pc.shape
    H = DIM_HIDDEN
    pc = pc.astype(jnp.float32)

    # ---- tiling (all static under jit) ----
    tb = _choose_batch_tile(B, N)
    num_blocks = -(-B // tb)
    b_pad = num_blocks * tb
    n_pad = -(-N // 8) * 8                 # keep (TB*N, H)<->(TB, N, H) reshape tile-aligned
    c_pad = max(8, -(-C // 8) * 8)         # pad K of the first matmul to a clean MXU push

    # Flatten points host-side: (B_pad*N_pad, C_pad); padded rows are sliced away later.
    x = jnp.pad(pc, ((0, b_pad - B), (0, n_pad - N), (0, c_pad - C)))
    x = x.reshape(b_pad * n_pad, c_pad)

    w1, b1, w2, b2 = params["enc0"]
    mids = params["enc_mid"]
    wo, bo = params["enc_out"]
    wd1, bd1, wd2, bd2 = params["dec"]

    # Pack for the kernel: stack mid layers, cast MXU operands to bf16 once,
    # zero-pad enc0 K to c_pad and the final logit layer to LANE lanes.
    w1p = jnp.pad(w1, ((0, c_pad - w1.shape[0]), (0, 0))).astype(jnp.bfloat16)
    w2b = w2.astype(jnp.bfloat16)
    wm = jnp.stack([w for w, _ in mids]).astype(jnp.bfloat16)        # (Lm, H, H)
    bm = jnp.stack([b for _, b in mids])                             # (Lm, 1, H) f32
    wob = wo.astype(jnp.bfloat16)
    wd1b = wd1.astype(jnp.bfloat16)
    wd2p = jnp.pad(wd2, ((0, 0), (0, LANE - wd2.shape[1]))).astype(jnp.bfloat16)
    bd2p = jnp.pad(bd2, ((0, 0), (0, LANE - bd2.shape[1])))

    n_mid = len(mids)
    rows = b_pad * n_pad
    flops = (2 * rows * c_pad * H                 # enc0 fc
             + 2 * rows * H * H * (n_mid + 2)     # enc0 fc2 + mid layers + enc_out
             + 2 * b_pad * H * H                  # dec fc1
             + 2 * b_pad * H * LANE)              # dec fc2
    transcendentals = rows * (c_pad + H) + b_pad * H
    bytes_accessed = (x.size * 4
                      + (b1.size + b2.size + bm.size + bo.size + bd1.size + bd2p.size) * 4
                      + (w1p.size + w2b.size + wm.size + wob.size + wd1b.size + wd2p.size) * 2
                      + b_pad * LANE * 4)

    weight_args = (w1p, b1, w2b, b2, wm, bm, wob, bo, wd1b, bd1, wd2p, bd2p)
    # Same block index every grid step -> weights DMA'd once, VMEM-resident across the grid.
    weight_specs = [pl.BlockSpec(a.shape, _zero_map(a.ndim)) for a in weight_args]

    kernel = functools.partial(deepsets_kernel, tb=tb, n_pad=n_pad, n_valid=N)

    out = pl.pallas_call(
        kernel,
        out_shape=jax.ShapeDtypeStruct((num_blocks, tb, LANE), jnp.float32),
        grid_spec=pltpu.PrefetchScalarGridSpec(
            num_scalar_prefetch=0,
            grid=(num_blocks,),
            in_specs=[pl.BlockSpec((tb * n_pad, c_pad), lambda b: (b, 0))] + weight_specs,
            out_specs=pl.BlockSpec((None, tb, LANE), lambda b: (b, 0, 0)),
        ),
        compiler_params=pltpu.CompilerParams(
            dimension_semantics=("parallel",),       # batch tiles independent -> megacore
            vmem_limit_bytes=32 * 1024 * 1024,       # well under v7x's 64 MiB physical
        ),
        cost_estimate=pl.CostEstimate(
            flops=flops,
            transcendentals=transcendentals,
            bytes_accessed=bytes_accessed),
    )(x, *weight_args)

    # torch: out = torch.mean(...,keepdim=True) -> dec -> squeeze() -> (B, 40)
    logits = out.reshape(b_pad, LANE)[:B, :NUM_CLASSES]
    return {"logit": logits}


if __name__ == "__main__":
    key = jax.random.PRNGKey(0)
    kp, kx = jax.random.split(key)
    B, N = 2, 8
    pc = jax.random.normal(kx, (B, N, N_INPUTS), jnp.float32)
    params = init_params(kp)

    out = deepsets_tanh_forward(pc, params)
    logit = jax.block_until_ready(out["logit"])
    assert logit.shape == (B, NUM_CLASSES), logit.shape
    assert bool(jnp.all(jnp.isfinite(logit)))
    print("KERNEL_OK")
</pallas_src>

<mosaic_0001>
module attributes {stable_mosaic.version = 11 : i64} {
  func.func @deepsets_kernel(%arg0: i32, %arg1: memref<8x8xf32, #tpu.memory_space<vmem>>, %arg2: memref<8x128xbf16, #tpu.memory_space<vmem>>, %arg3: memref<1x128xf32, #tpu.memory_space<vmem>>, %arg4: memref<128x128xbf16, #tpu.memory_space<vmem>>, %arg5: memref<1x128xf32, #tpu.memory_space<vmem>>, %arg6: memref<3x128x128xbf16, #tpu.memory_space<vmem>>, %arg7: memref<3x1x128xf32, #tpu.memory_space<vmem>>, %arg8: memref<128x128xbf16, #tpu.memory_space<vmem>>, %arg9: memref<1x128xf32, #tpu.memory_space<vmem>>, %arg10: memref<128x128xbf16, #tpu.memory_space<vmem>>, %arg11: memref<1x128xf32, #tpu.memory_space<vmem>>, %arg12: memref<128x128xbf16, #tpu.memory_space<vmem>>, %arg13: memref<1x128xf32, #tpu.memory_space<vmem>>, %arg14: memref<1x1x128xf32, #tpu.memory_space<vmem>>) attributes {dimension_semantics = [#tpu.dimension_semantics<parallel>], iteration_bounds = array<i64: 2>, scalar_prefetch = 0 : i64, scratch_operands = 0 : i64, tpu.core_type = #tpu.core_type<tc>, window_params = [{transform_indices = @transform_0, window_bounds = array<i64: 8, 8>}, {pipeline_mode = #tpu.pipeline_mode<synchronous>, transform_indices = @transform_1, window_bounds = array<i64: 8, 128>}, {pipeline_mode = #tpu.pipeline_mode<synchronous>, transform_indices = @transform_2, window_bounds = array<i64: 1, 128>}, {pipeline_mode = #tpu.pipeline_mode<synchronous>, transform_indices = @transform_3, window_bounds = array<i64: 128, 128>}, {pipeline_mode = #tpu.pipeline_mode<synchronous>, transform_indices = @transform_4, window_bounds = array<i64: 1, 128>}, {pipeline_mode = #tpu.pipeline_mode<synchronous>, transform_indices = @transform_5, window_bounds = array<i64: 3, 128, 128>}, {pipeline_mode = #tpu.pipeline_mode<synchronous>, transform_indices = @transform_6, window_bounds = array<i64: 3, 1, 128>}, {pipeline_mode = #tpu.pipeline_mode<synchronous>, transform_indices = @transform_7, window_bounds = array<i64: 128, 128>}, {pipeline_mode = #tpu.pipeline_mode<synchronous>, transform_indices = @transform_8, window_bounds = array<i64: 1, 128>}, {pipeline_mode = #tpu.pipeline_mode<synchronous>, transform_indices = @transform_9, window_bounds = array<i64: 128, 128>}, {pipeline_mode = #tpu.pipeline_mode<synchronous>, transform_indices = @transform_10, window_bounds = array<i64: 1, 128>}, {pipeline_mode = #tpu.pipeline_mode<synchronous>, transform_indices = @transform_11, window_bounds = array<i64: 128, 128>}, {pipeline_mode = #tpu.pipeline_mode<synchronous>, transform_indices = @transform_12, window_bounds = array<i64: 1, 128>}, {transform_indices = @transform_13, window_bounds = array<i64: 1, 1, 128>}]} {
    %c0 = arith.constant 0 : index
    %c0_0 = arith.constant 0 : index
    %0 = vector.load %arg1[%c0, %c0_0] : memref<8x8xf32, #tpu.memory_space<vmem>>, vector<8x8xf32>
    %1 = math.tanh %0 : vector<8x8xf32>
    %2 = arith.truncf %1 : vector<8x8xf32> to vector<8x8xbf16>
    %c0_1 = arith.constant 0 : index
    %c0_2 = arith.constant 0 : index
    %3 = vector.load %arg2[%c0_1, %c0_2] : memref<8x128xbf16, #tpu.memory_space<vmem>>, vector<8x128xbf16>
    %cst = arith.constant dense<0.000000e+00> : vector<8x128xf32>
    %4 = tpu.matmul %2, %3, %cst {dimension_numbers = #tpu.dot_dimension_numbers<[1], [0], [0], [1], [0, 0, 1, 1], [], []>} : vector<8x8xbf16>, vector<8x128xbf16>, vector<8x128xf32> -> vector<8x128xf32>
    %c0_3 = arith.constant 0 : index
    %c0_4 = arith.constant 0 : index
    %5 = vector.load %arg3[%c0_3, %c0_4] : memref<1x128xf32, #tpu.memory_space<vmem>>, vector<1x128xf32>
    %6 = vector.broadcast %5 : vector<1x128xf32> to vector<8x128xf32>
    %7 = arith.addf %4, %6 : vector<8x128xf32>
    %8 = math.tanh %7 : vector<8x128xf32>
    %9 = arith.truncf %8 : vector<8x128xf32> to vector<8x128xbf16>
    %c0_5 = arith.constant 0 : index
    %c0_6 = arith.constant 0 : index
    %10 = vector.load %arg4[%c0_5, %c0_6] : memref<128x128xbf16, #tpu.memory_space<vmem>>, vector<128x128xbf16>
    %cst_7 = arith.constant dense<0.000000e+00> : vector<8x128xf32>
    %11 = tpu.matmul %9, %10, %cst_7 {dimension_numbers = #tpu.dot_dimension_numbers<[1], [0], [0], [1], [0, 0, 1, 1], [], []>} : vector<8x128xbf16>, vector<128x128xbf16>, vector<8x128xf32> -> vector<8x128xf32>
    %c0_8 = arith.constant 0 : index
    %c0_9 = arith.constant 0 : index
    %12 = vector.load %arg5[%c0_8, %c0_9] : memref<1x128xf32, #tpu.memory_space<vmem>>, vector<1x128xf32>
    %13 = vector.broadcast %12 : vector<1x128xf32> to vector<8x128xf32>
    %14 = arith.addf %11, %13 : vector<8x128xf32>
    %c0_i32 = arith.constant 0 : i32
    %c2_i32 = arith.constant 2 : i32
    %15 = arith.addi %c0_i32, %c2_i32 : i32
    %c1_i32 = arith.constant 1 : i32
    %16 = scf.for %arg15 = %c0_i32 to %15 step %c1_i32 iter_args(%arg16 = %14) -> (vector<8x128xf32>)  : i32 {
      %50 = arith.truncf %arg16 : vector<8x128xf32> to vector<8x128xbf16>
      %51 = arith.index_cast %arg15 : i32 to index
      %c0_37 = arith.constant 0 : index
      %c0_38 = arith.constant 0 : index
      %52 = vector.load %arg6[%51, %c0_37, %c0_38] : memref<3x128x128xbf16, #tpu.memory_space<vmem>>, vector<1x128x128xbf16>
      %53 = vector.shape_cast %52 : vector<1x128x128xbf16> to vector<128x128xbf16>
      %cst_39 = arith.constant dense<0.000000e+00> : vector<8x128xf32>
      %54 = tpu.matmul %50, %53, %cst_39 {dimension_numbers = #tpu.dot_dimension_numbers<[1], [0], [0], [1], [0, 0, 1, 1], [], []>} : vector<8x128xbf16>, vector<128x128xbf16>, vector<8x128xf32> -> vector<8x128xf32>
      %55 = arith.index_cast %arg15 : i32 to index
      %c0_40 = arith.constant 0 : index
      %c0_41 = arith.constant 0 : index
      %56 = vector.load %arg7[%55, %c0_40, %c0_41] : memref<3x1x128xf32, #tpu.memory_space<vmem>>, vector<1x1x128xf32>
      %57 = vector.shape_cast %56 : vector<1x1x128xf32> to vector<1x128xf32>
      %58 = vector.broadcast %57 : vector<1x128xf32> to vector<8x128xf32>
      %59 = arith.addf %54, %58 : vector<8x128xf32>
      %cst_42 = arith.constant 0.000000e+00 : f32
      %60 = vector.broadcast %cst_42 : f32 to vector<8x128xf32>
      %61 = arith.maximumf %59, %60 : vector<8x128xf32>
      %62 = arith.addf %arg16, %61 : vector<8x128xf32>
      scf.yield %62 : vector<8x128xf32>
    }
    %c2_i32_10 = arith.constant 2 : i32
    %17 = arith.truncf %16 : vector<8x128xf32> to vector<8x128xbf16>
    %c2 = arith.constant 2 : index
    %c0_11 = arith.constant 0 : index
    %c0_12 = arith.constant 0 : index
    %18 = vector.load %arg6[%c2, %c0_11, %c0_12] : memref<3x128x128xbf16, #tpu.memory_space<vmem>>, vector<1x128x128xbf16>
    %19 = vector.shape_cast %18 : vector<1x128x128xbf16> to vector<128x128xbf16>
    %cst_13 = arith.constant dense<0.000000e+00> : vector<8x128xf32>
    %20 = tpu.matmul %17, %19, %cst_13 {dimension_numbers = #tpu.dot_dimension_numbers<[1], [0], [0], [1], [0, 0, 1, 1], [], []>} : vector<8x128xbf16>, vector<128x128xbf16>, vector<8x128xf32> -> vector<8x128xf32>
    %c2_14 = arith.constant 2 : index
    %c0_15 = arith.constant 0 : index
    %c0_16 = arith.constant 0 : index
    %21 = vector.load %arg7[%c2_14, %c0_15, %c0_16] : memref<3x1x128xf32, #tpu.memory_space<vmem>>, vector<1x1x128xf32>
    %22 = vector.shape_cast %21 : vector<1x1x128xf32> to vector<1x128xf32>
    %23 = vector.broadcast %22 : vector<1x128xf32> to vector<8x128xf32>
    %24 = arith.addf %20, %23 : vector<8x128xf32>
    %25 = arith.addf %16, %24 : vector<8x128xf32>
    %26 = arith.truncf %25 : vector<8x128xf32> to vector<8x128xbf16>
    %c0_17 = arith.constant 0 : index
    %c0_18 = arith.constant 0 : index
    %27 = vector.load %arg8[%c0_17, %c0_18] : memref<128x128xbf16, #tpu.memory_space<vmem>>, vector<128x128xbf16>
    %cst_19 = arith.constant dense<0.000000e+00> : vector<8x128xf32>
    %28 = tpu.matmul %26, %27, %cst_19 {dimension_numbers = #tpu.dot_dimension_numbers<[1], [0], [0], [1], [0, 0, 1, 1], [], []>} : vector<8x128xbf16>, vector<128x128xbf16>, vector<8x128xf32> -> vector<8x128xf32>
    %c0_20 = arith.constant 0 : index
    %c0_21 = arith.constant 0 : index
    %29 = vector.load %arg9[%c0_20, %c0_21] : memref<1x128xf32, #tpu.memory_space<vmem>>, vector<1x128xf32>
    %30 = vector.broadcast %29 : vector<1x128xf32> to vector<8x128xf32>
    %31 = arith.addf %28, %30 : vector<8x128xf32>
    %32 = vector.shape_cast %31 : vector<8x128xf32> to vector<1x8x128xf32>
    %cst_22 = arith.constant dense<0.000000e+00> : vector<1x128xf32>
    %33 = vector.multi_reduction <add>, %32, %cst_22 [1] : vector<1x8x128xf32> to vector<1x128xf32>
    %cst_23 = arith.constant 8.000000e+00 : f32
    %34 = vector.broadcast %cst_23 : f32 to vector<1x128xf32>
    %35 = arith.divf %33, %34 : vector<1x128xf32>
    %36 = arith.truncf %35 : vector<1x128xf32> to vector<1x128xbf16>
    %c0_24 = arith.constant 0 : index
    %c0_25 = arith.constant 0 : index
    %37 = vector.load %arg10[%c0_24, %c0_25] : memref<128x128xbf16, #tpu.memory_space<vmem>>, vector<128x128xbf16>
    %cst_26 = arith.constant dense<0.000000e+00> : vector<1x128xf32>
    %38 = tpu.matmul %36, %37, %cst_26 {dimension_numbers = #tpu.dot_dimension_numbers<[1], [0], [0], [1], [0, 0, 1, 1], [], []>} : vector<1x128xbf16>, vector<128x128xbf16>, vector<1x128xf32> -> vector<1x128xf32>
    %c0_27 = arith.constant 0 : index
    %c0_28 = arith.constant 0 : index
    %39 = vector.load %arg11[%c0_27, %c0_28] : memref<1x128xf32, #tpu.memory_space<vmem>>, vector<1x128xf32>
    %40 = arith.addf %38, %39 : vector<1x128xf32>
    %41 = math.tanh %40 : vector<1x128xf32>
    %42 = arith.truncf %41 : vector<1x128xf32> to vector<1x128xbf16>
    %c0_29 = arith.constant 0 : index
    %c0_30 = arith.constant 0 : index
    %43 = vector.load %arg12[%c0_29, %c0_30] : memref<128x128xbf16, #tpu.memory_space<vmem>>, vector<128x128xbf16>
    %cst_31 = arith.constant dense<0.000000e+00> : vector<1x128xf32>
    %44 = tpu.matmul %42, %43, %cst_31 {dimension_numbers = #tpu.dot_dimension_numbers<[1], [0], [0], [1], [0, 0, 1, 1], [], []>} : vector<1x128xbf16>, vector<128x128xbf16>, vector<1x128xf32> -> vector<1x128xf32>
    %c0_32 = arith.constant 0 : index
    %c0_33 = arith.constant 0 : index
    %45 = vector.load %arg13[%c0_32, %c0_33] : memref<1x128xf32, #tpu.memory_space<vmem>>, vector<1x128xf32>
    %46 = arith.addf %44, %45 : vector<1x128xf32>
    %c0_34 = arith.constant 0 : index
    %c0_35 = arith.constant 0 : index
    %c0_36 = arith.constant 0 : index
    %47 = vector.load %arg14[%c0_34, %c0_35, %c0_36] : memref<1x1x128xf32, #tpu.memory_space<vmem>>, vector<1x1x128xf32>
    %48 = vector.shape_cast %47 : vector<1x1x128xf32> to vector<1x128xf32>
    %49 = vector.shape_cast %46 : vector<1x128xf32> to vector<1x1x128xf32>
    tpu.vector_store %arg14[%c0_34, %c0_35, %c0_36], %49 {strides = array<i32>} : memref<1x1x128xf32, #tpu.memory_space<vmem>>, vector<1x1x128xf32>,
    return
  }
  func.func @transform_0(%arg0: i32) -> (i32, i32) {
    %c0_i32 = arith.constant 0 : i32
    %c0_i32_0 = arith.constant 0 : i32
    return %arg0, %c0_i32 : i32, i32
  }
  func.func @transform_1(%arg0: i32) -> (i32, i32) {
    %c0_i32 = arith.constant 0 : i32
    %c0_i32_0 = arith.constant 0 : i32
    %c0_i32_1 = arith.constant 0 : i32
    return %c0_i32, %c0_i32_0 : i32, i32
  }
  func.func @transform_2(%arg0: i32) -> (i32, i32) {
    %c0_i32 = arith.constant 0 : i32
    %c0_i32_0 = arith.constant 0 : i32
    %c0_i32_1 = arith.constant 0 : i32
    return %c0_i32, %c0_i32_0 : i32, i32
  }
  func.func @transform_3(%arg0: i32) -> (i32, i32) {
    %c0_i32 = arith.constant 0 : i32
    %c0_i32_0 = arith.constant 0 : i32
    %c0_i32_1 = arith.constant 0 : i32
    return %c0_i32, %c0_i32_0 : i32, i32
  }
  func.func @transform_4(%arg0: i32) -> (i32, i32) {
    %c0_i32 = arith.constant 0 : i32
    %c0_i32_0 = arith.constant 0 : i32
    %c0_i32_1 = arith.constant 0 : i32
    return %c0_i32, %c0_i32_0 : i32, i32
  }
  func.func @transform_5(%arg0: i32) -> (i32, i32, i32) {
    %c0_i32 = arith.constant 0 : i32
    %c0_i32_0 = arith.constant 0 : i32
    %c0_i32_1 = arith.constant 0 : i32
    %c0_i32_2 = arith.constant 0 : i32
    return %c0_i32, %c0_i32_0, %c0_i32_1 : i32, i32, i32
  }
  func.func @transform_6(%arg0: i32) -> (i32, i32, i32) {
    %c0_i32 = arith.constant 0 : i32
    %c0_i32_0 = arith.constant 0 : i32
    %c0_i32_1 = arith.constant 0 : i32
    %c0_i32_2 = arith.constant 0 : i32
    return %c0_i32, %c0_i32_0, %c0_i32_1 : i32, i32, i32
  }
  func.func @transform_7(%arg0: i32) -> (i32, i32) {
    %c0_i32 = arith.constant 0 : i32
    %c0_i32_0 = arith.constant 0 : i32
    %c0_i32_1 = arith.constant 0 : i32
    return %c0_i32, %c0_i32_0 : i32, i32
  }
  func.func @transform_8(%arg0: i32) -> (i32, i32) {
    %c0_i32 = arith.constant 0 : i32
    %c0_i32_0 = arith.constant 0 : i32
    %c0_i32_1 = arith.constant 0 : i32
    return %c0_i32, %c0_i32_0 : i32, i32
  }
  func.func @transform_9(%arg0: i32) -> (i32, i32) {
    %c0_i32 = arith.constant 0 : i32
    %c0_i32_0 = arith.constant 0 : i32
    %c0_i32_1 = arith.constant 0 : i32
    return %c0_i32, %c0_i32_0 : i32, i32
  }
  func.func @transform_10(%arg0: i32) -> (i32, i32) {
    %c0_i32 = arith.constant 0 : i32
    %c0_i32_0 = arith.constant 0 : i32
    %c0_i32_1 = arith.constant 0 : i32
    return %c0_i32, %c0_i32_0 : i32, i32
  }
  func.func @transform_11(%arg0: i32) -> (i32, i32) {
    %c0_i32 = arith.constant 0 : i32
    %c0_i32_0 = arith.constant 0 : i32
    %c0_i32_1 = arith.constant 0 : i32
    return %c0_i32, %c0_i32_0 : i32, i32
  }
  func.func @transform_12(%arg0: i32) -> (i32, i32) {
    %c0_i32 = arith.constant 0 : i32
    %c0_i32_0 = arith.constant 0 : i32
    %c0_i32_1 = arith.constant 0 : i32
    return %c0_i32, %c0_i32_0 : i32, i32
  }
  func.func @transform_13(%arg0: i32) -> (i32, i32, i32) {
    %c0_i32 = arith.constant 0 : i32
    %c0_i32_0 = arith.constant 0 : i32
    %c0_i32_1 = arith.constant 0 : i32
    return %arg0, %c0_i32, %c0_i32_0 : i32, i32, i32
  }
}

</mosaic_0001>

<bundles_post_ra>
// kernel: deepsets_tanh_forward.1
= control target key start
LH: loop header
LB: loop body
LE: loop exit
PB: predicated region body
PF: predicated region fallthrough
CT: control target
= control target key end

     0   :  { %s2114_s0 = inlined_call_operand.vmem [shape: f32[16,8], index: 0, kind: input, shape index: {}]   ;;  %s2115_s1 = inlined_call_operand.vmem [shape: bf16[8,128], index: 1, kind: input, shape index: {}]   ;;  %s2116_s2 = inlined_call_operand.vmem [shape: f32[1,128], index: 2, kind: input, shape index: {}]   ;;  %s2117_s3 = inlined_call_operand.vmem [shape: bf16[128,128], index: 3, kind: input, shape index: {}]   ;;  %s2118_s4 = inlined_call_operand.vmem [shape: f32[1,128], index: 4, kind: input, shape index: {}]   ;;  %s2119_s5 = inlined_call_operand.vmem [shape: bf16[3,128,128], index: 5, kind: input, shape index: {}]   ;;  %s2120_s6 = inlined_call_operand.vmem [shape: f32[3,1,128], index: 6, kind: input, shape index: {}]   ;;  %s2121_s7 = inlined_call_operand.vmem [shape: bf16[128,128], index: 7, kind: input, shape index: {}]   ;;  %s2122_s8 = inlined_call_operand.vmem [shape: f32[1,128], index: 8, kind: input, shape index: {}]   ;;  %s2123_s9 = inlined_call_operand.vmem [shape: bf16[128,128], index: 9, kind: input, shape index: {}]   ;;  %s2124_s10 = inlined_call_operand.vmem [shape: f32[1,128], index: 10, kind: input, shape index: {}]   ;;  %s2125_s11 = inlined_call_operand.vmem [shape: bf16[128,128], index: 11, kind: input, shape index: {}]   ;;  %s2126_s12 = inlined_call_operand.vmem [shape: f32[1,128], index: 12, kind: input, shape index: {}]   ;;  %s2127_s13 = inlined_call_operand.hbm [shape: f32[2,1,128], index: 13, kind: output, shape index: {}]  }
   0x1   :  { %2129 = sst [smem:[#allocation7_spill]] %s2115_s1 }
   0x2   :  { %18 = vsyncpa [#allocation3], 0 }
   0x3   :  { %20 = vsyncpa [#allocation3 + $0x1], 0  ;;  %s1791_s25 = smov 0   ;;  %s1793_s26 = smov 0  }
   0x4   :  { %s1795_s27 = smov 0   ;;  %s1797_s28 = smov 0  }
   0x5 LB: > { %2130 = sst [smem:[#allocation5_spill]] %s1702_s27  ;;  %s1812_s29 = sadd.s32 4294967295, %s1706_s28   ;;  %s1706_s28 = sphi %s1797_s28, %s2142_s28   ;;  %s1702_s27 = sphi %s1795_s27, %s2139_s27   ;;  %s1698_s26 = sphi %s1793_s26, %s2141_s26   ;;  %s1694_s25 = sphi %s1791_s25, %s2140_s25  }
   0x6   : > { %s1261_s30 = sadd.s32 4294967294, %s1706_s28   ;;  %s1816_s14 = sadd.s32 1, %s1706_s28  }
   0x7   : > { %s311_s15 = sadd.s32 1, %s1702_s27  ;;  %s308_s16 = ssub.s32 %s1706_s28, %s1816_s14 }
   0x8   : > { %p321_p0 = scmp.ne.s32.totalorder %s1702_s27, %s1698_s26  ;;  %p309_p1 = scmp.eq.s32.totalorder %s308_s16, 0 }
   0x9   : > { %p322_p2 = scmp.eq.s32.totalorder %s1812_s29, 1  ;;  %p327_p3 = scmp.ne.s32.totalorder %s1698_s26, %s1694_s25 }
   0xa   : > { %p328_p4 = scmp.eq.s32.totalorder %s1261_s30, 1  ;;  %p1264_p7 = scmp.ge.s32.totalorder %s1706_s28, 1 }
   0xb   : > { %s1827_s17 = scalar_select %p309_p1, %s1702_s27, %s311_s15  }
   0xc   : > { %p1829_p5 = por %p322_p2, %p321_p0  ;;  %p1833_p6 = por %p328_p4, %p327_p3 }
   0xd   : > { %2131 = sst [smem:[#allocation6_spill]] %s1827_s17  ;;  %p389_p8 = scmp.lt.s32.totalorder %s1706_s28, 3 }
   0xf   : > { %p390_p9 = pnand %p1264_p7, %p389_p8 }
  0x10   : > { %s2134_s1 = sld [smem:[#allocation7_spill]] (!%p390_p9)  ;;  %p431_p10 = scmp.lt.s32.totalorder (!%p390_p9), %s1812_s29, 1 }
  0x11   : > { %393 = sbr.rel (%p390_p9) target bundleno = 1520 (0x5f0), region = 72  ;;  %s1895_s20 = smov (!%p390_p9), 0  }
  0x16   : > { %v439_v0 = vld [vmem:[%s2134_s1] sm:$0xf]  ;;  %vm451_vm0 = vcmask 1043456   ;;  %v1716_v1 = vmov 0.0   ;;  %vm1717_vm1 = vmmov 0   ;;  %v1584_v3 = vld [vmem:[%s2117_s3 + $0x38] sm:$0xff]  }
  0x17   : > { %1399 = vmatprep.subr.bf16.mxu0 %v1716_v1  ;;  %v453_v2 = vsel %vm451_vm0, %v439_v0, 0  ;;  %1401 = vmatprep.mubr.msk.bf16.mxu0 %vm1717_vm1, %v1716_v1  ;;  %s432_s30 = scalar_select %p431_p10, %s1812_s29, 1  ;;  %v1585_v4 = vld [vmem:[%s2117_s3 + $0x30] sm:$0xff]   ;;  %v1586_v5 = vld [vmem:[%s2117_s3 + $0x28] sm:$0xff]   ;;  %vm447_vm2 = vcmask 64512   ;;  %v1587_v9 = vld [vmem:[%s2117_s3 + $0x20] sm:$0xff]  }
  0x18   : > { %1400 = vmatpush3.bf16.msra.mxu0 %v453_v2  ;;  %1405 = vmatprep.subr.bf16.mxu1 %v1716_v1  ;;  %v1588_v10 = vld [vmem:[%s2117_s3 + $0x18] sm:$0xff]   ;;  %v1589_v11 = vld [vmem:[%s2117_s3 + $0x10] sm:$0xff]   ;;  %v1590_v12 = vld [vmem:[%s2117_s3 + $0x8] sm:$0xff]  }
  0x19   : > { %1421 = vmatprep.mubr.msk.bf16.mxu1 %vm1717_vm1, %v1716_v1  ;;  %1406 = vmatpush3.bf16.msra.mxu1 %v1584_v3  ;;  %s1265_s21 = sshll.u32 %s432_s30, 3  ;;  %v1591_v13 = vld [vmem:[%s2117_s3] sm:$0xff]  }
  0x1a   : > { %1407 = vmatprep.subr.bf16.mxu1 %v1716_v1  ;;  %s434_s1 = scalar_lea.vmem %s2114_s0, %s1265_s21  ;;  %v1266_v14 = vld [vmem:[%s2116_s2] ss:$0 sm:$0xff] }
  0x1b   : > { %v436_v6 = vld [vmem:[%s434_s1] sm:$0xff]  ;;  %s2135_s1 = sand.u32 1, %s1698_s26  }
  0x1c   : > { %1592 = vtanh.f32 %v436_v6  ;;  %v1268_v22 = vld [vmem:[%s2118_s4] ss:$0 sm:$0xff]  ;;  %s1893_s17 = scalar_lea.vmem [#allocation2], %s2135_s1 }
  0x1d   : > { %1408 = vmatpush3.bf16.msra.mxu1 %v1585_v4 }
  0x1e   : > { %1409 = vmatprep.subr.bf16.mxu1 %v1716_v1 }
  0x21   : > { %1410 = vmatpush3.bf16.msra.mxu1 %v1586_v5 }
  0x22   : > { %1411 = vmatprep.subr.bf16.mxu1 %v1716_v1 }
  0x25   : > { %1412 = vmatpush3.bf16.msra.mxu1 %v1587_v9 }
  0x26   : > { %1413 = vmatprep.subr.bf16.mxu1 %v1716_v1 }
  0x29   : > { %v1593_v7 = vpop.eup %1592  ;;  %1414 = vmatpush3.bf16.msra.mxu1 %v1588_v10 }
  0x2a   : > { %v438_v8 = vpack.c.bf16 %v1593_v7, %v1593_v7  ;;  %1415 = vmatprep.subr.bf16.mxu1 %v1716_v1 }
  0x2c   : > { %1402 = vmatmul.mubr.msk.bf16.vlgmr.msra.gmra.mxu0 %vm447_vm2, %v438_v8 }
  0x2d   : > { %1416 = vmatpush3.bf16.msra.mxu1 %v1589_v11 }
  0x2e   : > { %1417 = vmatprep.subr.bf16.mxu1 %v1716_v1 }
  0x31   : > { %1418 = vmatpush3.bf16.msra.mxu1 %v1590_v12 }
  0x32   : > { %1419 = vmatprep.subr.bf16.mxu1 %v1716_v1 }
  0x35   : > { %1420 = vmatpush3.bf16.msra.mxu1 %v1591_v13 }
  0xec   : > { %v489_v15 = vpop.f32.mrf.mxu0 }
  0xed   : > { %v490_v16 = vadd.f32 %v1266_v14, %v489_v15 }
  0xee   : > { %v1403_v17 = vpop.f32.mrf.mxu0 }
  0xef   : > { %1594 = vtanh.f32 %v490_v16 }
  0xf0   : > { %v492_v18 = vpop.f32.mrf.mxu0 }
  0xf2   : > { %v1404_v19 = vpop.f32.mrf.mxu0 }
  0xfc   : > { %v1595_v20 = vpop.eup %1594 }
  0xfd   : > { %v496_v21 = vpack.c.bf16 %v1595_v20, %v1595_v20 }
  0xff   : > { %1422 = vmatmul.mubr.bf16.vlgmr.msra.gmra.mxu1 %v496_v21 }
 0x1bf   : > { %v602_v23 = vpop.f32.mrf.mxu1 }
 0x1c0   : > { %v603_v24 = vadd.f32 %v1268_v22, %v602_v23  }
 0x1c1   : > { %v1423_v25 = vpop.f32.mrf.mxu1 }
 0x1c2   : > { %v1708_v28 = vmov %v603_v24  }
 0x1c3   : > { %v605_v26 = vpop.f32.mrf.mxu1 }
 0x1c5   : > { %v1424_v27 = vpop.f32.mrf.mxu1 }
 0x1c6 LB: >> { %v1718_v29 = vmov 0.0   ;;  %vm1719_vm3 = vmmov 0   ;;  %s1342_s30 = sshll.u32 %s1714_s20, 6  ;;  %v615_v38 = vpack.c.bf16 %v1710_v28, %v1710_v28  ;;  %s635_s24 = scalar_lea.vmem %s2120_s6, %s1714_s20  ;;  %s1714_s20 = sphi %s1895_s20, %s613_s20   ;;  %v1710_v28 = vphi %v1708_v28, %v1709_v28  }
 0x1c7   : >> { %1425 = vmatprep.subr.bf16.mxu0 %v1718_v29  ;;  %1441 = vmatprep.mubr.msk.bf16.mxu0 %vm1719_vm3, %v1718_v29  ;;  %s618_s21 = scalar_lea.vmem %s2119_s5, %s1342_s30  ;;  %v1279_v39 = vld [vmem:[%s635_s24] ss:$0 sm:$0xff]  ;;  %s613_s20 = sadd.s32 1, %s1714_s20  }
 0x1c8   : >> { %v1596_v30 = vld [vmem:[%s618_s21 + $0x38] sm:$0xff]   ;;  %v1597_v31 = vld [vmem:[%s618_s21 + $0x30] sm:$0xff]   ;;  %v1598_v32 = vld [vmem:[%s618_s21 + $0x28] sm:$0xff]   ;;  %p610_p11 = scmp.ge.s32.totalorder %s613_s20, 2  }
 0x1c9   : >> { %1426 = vmatpush3.bf16.msra.mxu0 %v1596_v30  ;;  %v1599_v33 = vld [vmem:[%s618_s21 + $0x20] sm:$0xff]   ;;  %v1600_v34 = vld [vmem:[%s618_s21 + $0x18] sm:$0xff]   ;;  %v1601_v35 = vld [vmem:[%s618_s21 + $0x10] sm:$0xff]   ;;  %1465 = vmatprep.subr.bf16.mxu1 (%p610_p11), %v1716_v1  ;;  %s1339_s30 = sshll.u32 (%p610_p11), %s1812_s29, 4  ;;  %s1195_s15 = sshll.u32 (%p610_p11), %s1893_s17, 4  ;;  %s2072_s15 = int_to_ptr.vmem [resolvable:$true] %s1195_s15 }
 0x1ca   : >> { %1427 = vmatprep.subr.bf16.mxu0 %v1718_v29  ;;  %v1602_v36 = vld [vmem:[%s618_s21 + $0x8] sm:$0xff]   ;;  %v1603_v37 = vld [vmem:[%s618_s21] sm:$0xff]   ;;  %v1604_v47 = vld [vmem:[%s2119_s5 + $0xb8] sm:$0xff] (%p610_p11)   ;;  %1481 = vmatprep.mubr.msk.bf16.mxu1 (%p610_p11), %vm1717_vm1, %v1716_v1  ;;  %s2070_s21 = scalar_lea.hbm (%p610_p11), %s2127_s13, %s1339_s30  ;;  %s2137_s22 = sand.u32 (%p610_p11), 1, %s1698_s26  }
 0x1cb   : > { %v1605_v48 = vld [vmem:[%s2119_s5 + $0xb0] sm:$0xff] (%p610_p11)   ;;  %v1606_v49 = vld [vmem:[%s2119_s5 + $0xa8] sm:$0xff] (%p610_p11)   ;;  %v1612_v50 = vld [vmem:[%s2121_s7 + $0x38] sm:$0xff] (%p610_p11)   ;;  %s1183_s23 = scalar_lea.sflag (%p610_p11), [#allocation3], %s2137_s22  ;;  %s1638_s24 = scalar_lea.vmem (%p610_p11), %s2072_s15, 16 }
 0x1cc   : > { %v1607_v51 = vld [vmem:[%s2119_s5 + $0xa0] sm:$0xff] (%p610_p11)   ;;  %1466 = vmatpush3.bf16.msra.mxu1 (%p610_p11), %v1612_v50  ;;  %v1613_v52 = vld [vmem:[%s2121_s7 + $0x30] sm:$0xff] (%p610_p11)   ;;  %v1608_v53 = vld [vmem:[%s2119_s5 + $0x98] sm:$0xff] (%p610_p11)   ;;  %p1639_p12 = scmp.ne.s32.totalorder (%p610_p11), %s2072_s15, %s1638_s24  ;;  %s1720_s29 = smov (%p610_p11), [#allocation2]  }
 0x1cd   : >> { %1428 = vmatpush3.bf16.msra.mxu0 %v1597_v31  ;;  %1467 = vmatprep.subr.bf16.mxu1 (%p610_p11), %v1716_v1  ;;  %v1614_v54 = vld [vmem:[%s2121_s7 + $0x28] sm:$0xff] (%p610_p11)   ;;  %v1609_v55 = vld [vmem:[%s2119_s5 + $0x90] sm:$0xff] (%p610_p11)   ;;  %v1615_v56 = vld [vmem:[%s2121_s7 + $0x20] sm:$0xff] (%p610_p11)   ;;  %s1642_s27 = sshll.u32 (%p610_p11), %s1720_s29, 4  ;;  %s1643_s27 = int_to_ptr.vmem [resolvable:$false] %s1642_s27 }
 0x1ce   : >> { %1429 = vmatprep.subr.bf16.mxu0 %v1718_v29  ;;  %v1610_v57 = vld [vmem:[%s2119_s5 + $0x88] sm:$0xff] (%p610_p11)   ;;  %v1616_v58 = vld [vmem:[%s2121_s7 + $0x18] sm:$0xff] (%p610_p11)   ;;  %v1611_v59 = vld [vmem:[%s2119_s5 + $0x80] sm:$0xff] (%p610_p11)   ;;  %p1640_p13 = pnand (%p610_p11), %p1639_p12, %p1829_p5  ;;  %s1644_s1 = scalar_lea.vmem (%p610_p11), %s1643_s27, 32 }
 0x1cf   : > { %v1617_v60 = vld [vmem:[%s2121_s7 + $0x10] sm:$0xff] (%p610_p11)   ;;  %v1618_v62 = vld [vmem:[%s2121_s7 + $0x8] sm:$0xff] (%p610_p11)   ;;  %v1619_v63 = vld [vmem:[%s2121_s7] sm:$0xff] (%p610_p11)   ;;  %p1645_p1 = scmp.lt.s32.totalorder (%p610_p11), %s2072_s15, %s1643_s27  ;;  %p1646_p2 = scmp.lt.s32.totalorder (%p610_p11), %s1644_s1, %s1638_s24 }
 0x1d0   : > { %1468 = vmatpush3.bf16.msra.mxu1 (%p610_p11), %v1613_v52  ;;  %v1620_v0 = vld [vmem:[%s2123_s9 + $0x38] sm:$0xff] (%p610_p11)   ;;  %v1621_v2 = vld [vmem:[%s2123_s9 + $0x30] sm:$0xff] (%p610_p11)   ;;  %v1622_v3 = vld [vmem:[%s2123_s9 + $0x28] sm:$0xff] (%p610_p11)   ;;  %p1641_p0 = pneg (%p610_p11), %p1640_p13 }
 0x1d1   : >> { %1430 = vmatpush3.bf16.msra.mxu0 %v1598_v32  ;;  %1469 = vmatprep.subr.bf16.mxu1 (%p610_p11), %v1716_v1  ;;  %v1305_v4 = vld [vmem:[%s2120_s6 + $0x2] ss:$0 sm:$0xff] (%p610_p11)  ;;  %v1624_v13 = vld [vmem:[%s2123_s9 + $0x18] sm:$0xff] (%p610_p11)   ;;  %v1625_v14 = vld [vmem:[%s2123_s9 + $0x10] sm:$0xff] (%p610_p11)   ;;  %p1647_p3 = por (%p610_p11), %p1646_p2, %p1645_p1 }
 0x1d2   : >> { %1431 = vmatprep.subr.bf16.mxu0 %v1718_v29  ;;  %v1623_v12 = vld [vmem:[%s2123_s9 + $0x20] sm:$0xff] (%p610_p11)   ;;  %v1626_v15 = vld [vmem:[%s2123_s9 + $0x8] sm:$0xff] (%p610_p11)   ;;  %v1628_v17 = vld [vmem:[%s2125_s11 + $0x38] sm:$0xff] (%p610_p11)  }
 0x1d3   : > { %v1627_v16 = vld [vmem:[%s2123_s9] sm:$0xff] (%p610_p11)   ;;  %v1629_v18 = vld [vmem:[%s2125_s11 + $0x30] sm:$0xff] (%p610_p11)   ;;  %v1630_v19 = vld [vmem:[%s2125_s11 + $0x28] sm:$0xff] (%p610_p11)   ;;  %p1648_p4 = pnand (%p610_p11), %p1647_p3, %p1641_p0 }
 0x1d4   : > { %1470 = vmatpush3.bf16.msra.mxu1 (%p610_p11), %v1614_v54  ;;  %v1314_v20 = vld [vmem:[%s2122_s8] ss:$0 sm:$0xff] (%p610_p11) }
 0x1d5   : >> { %1432 = vmatpush3.bf16.msra.mxu0 %v1599_v33  ;;  %1471 = vmatprep.subr.bf16.mxu1 (%p610_p11), %v1716_v1 }
 0x1d6   : >> { %1433 = vmatprep.subr.bf16.mxu0 %v1718_v29 }
 0x1d8   : > { %1472 = vmatpush3.bf16.msra.mxu1 (%p610_p11), %v1615_v56 }
 0x1d9   : >> { %1434 = vmatpush3.bf16.msra.mxu0 %v1600_v34  ;;  %1473 = vmatprep.subr.bf16.mxu1 (%p610_p11), %v1716_v1  ;;  %v1631_v34 = vld [vmem:[%s2125_s11 + $0x20] sm:$0xff] (%p610_p11)  }
 0x1da   : >> { %1435 = vmatprep.subr.bf16.mxu0 %v1718_v29 }
 0x1dc   : > { %1474 = vmatpush3.bf16.msra.mxu1 (%p610_p11), %v1616_v58 }
 0x1dd   : >> { %1436 = vmatpush3.bf16.msra.mxu0 %v1601_v35  ;;  %1475 = vmatprep.subr.bf16.mxu1 (%p610_p11), %v1716_v1  ;;  %v1632_v35 = vld [vmem:[%s2125_s11 + $0x18] sm:$0xff] (%p610_p11)  }
 0x1de   : >> { %1437 = vmatprep.subr.bf16.mxu0 %v1718_v29 }
 0x1e0   : > { %1476 = vmatpush3.bf16.msra.mxu1 (%p610_p11), %v1617_v60 }
 0x1e1   : >> { %1438 = vmatpush3.bf16.msra.mxu0 %v1602_v36  ;;  %1477 = vmatprep.subr.bf16.mxu1 (%p610_p11), %v1716_v1  ;;  %v1633_v36 = vld [vmem:[%s2125_s11 + $0x10] sm:$0xff] (%p610_p11)  }
 0x1e2   : >> { %1439 = vmatprep.subr.bf16.mxu0 %v1718_v29 }
 0x1e4   : > { %1478 = vmatpush3.bf16.msra.mxu1 (%p610_p11), %v1618_v62 }
 0x1e5   : >> { %1440 = vmatpush3.bf16.msra.mxu0 %v1603_v37  ;;  %1479 = vmatprep.subr.bf16.mxu1 (%p610_p11), %v1716_v1  ;;  %v1634_v37 = vld [vmem:[%s2125_s11 + $0x8] sm:$0xff] (%p610_p11)  }
 0x1e6   : > { %1445 = vmatprep.subr.bf16.mxu0 (%p610_p11), %v1716_v1 }
 0x1e8   : >> { %1442 = vmatmul.mubr.bf16.vlgmr.msra.gmra.mxu0 %v615_v38  ;;  %1480 = vmatpush3.bf16.msra.mxu1 (%p610_p11), %v1619_v63  ;;  %v1635_v38 = vld [vmem:[%s2125_s11] sm:$0xff] (%p610_p11)  }
 0x1e9   : > { %1461 = vmatprep.mubr.msk.bf16.mxu0 (%p610_p11), %vm1717_vm1, %v1716_v1  ;;  %1446 = vmatpush3.bf16.msra.mxu0 (%p610_p11), %v1604_v47 }
 0x1ea   : > { %1447 = vmatprep.subr.bf16.mxu0 (%p610_p11), %v1716_v1  ;;  %1505 = vmatprep.subr.bf16.mxu1 (%p610_p11), %v1716_v1 }
 0x1ed   : > { %1448 = vmatpush3.bf16.msra.mxu0 (%p610_p11), %v1605_v48 }
 0x1ee   : > { %1449 = vmatprep.subr.bf16.mxu0 (%p610_p11), %v1716_v1 }
 0x1f1   : > { %1450 = vmatpush3.bf16.msra.mxu0 (%p610_p11), %v1606_v49 }
 0x1f2   : > { %1451 = vmatprep.subr.bf16.mxu0 (%p610_p11), %v1716_v1 }
 0x1f5   : > { %1452 = vmatpush3.bf16.msra.mxu0 (%p610_p11), %v1607_v51 }
 0x1f6   : > { %1453 = vmatprep.subr.bf16.mxu0 (%p610_p11), %v1716_v1 }
 0x1f9   : > { %1454 = vmatpush3.bf16.msra.mxu0 (%p610_p11), %v1608_v53 }
 0x1fa   : > { %1455 = vmatprep.subr.bf16.mxu0 (%p610_p11), %v1716_v1 }
 0x1fd   : > { %1456 = vmatpush3.bf16.msra.mxu0 (%p610_p11), %v1609_v55 }
 0x1fe   : > { %1457 = vmatprep.subr.bf16.mxu0 (%p610_p11), %v1716_v1 }
 0x201   : > { %1458 = vmatpush3.bf16.msra.mxu0 (%p610_p11), %v1610_v57 }
 0x202   : > { %1459 = vmatprep.subr.bf16.mxu0 (%p610_p11), %v1716_v1 }
 0x205   : > { %1460 = vmatpush3.bf16.msra.mxu0 (%p610_p11), %v1611_v59 }
 0x206   : > { %1485 = vmatprep.subr.bf16.mxu0 (%p610_p11), %v1716_v1 }
 0x2a8   : >> { %v725_v40 = vpop.f32.mrf.mxu0 }
 0x2a9   : >> { %v726_v41 = vadd.f32 %v1279_v39, %v725_v40  ;;  %v985_v39 = vld [vmem:[%s2124_s10] sm:$0x1] (%p610_p11) }
 0x2aa   : >> { %v1443_v42 = vpop.f32.mrf.mxu0 }
 0x2ab   : >> { %v731_v43 = vmax.f32 %v726_v41, 0.0 }
 0x2ac   : >> { %v728_v44 = vpop.f32.mrf.mxu0  ;;  %612 = sbr.rel (!%p610_p11) target bundleno = 454 (0x1c6), region = 118 }
 0x2ad   : >> { %v1908_v28 = vadd.f32 %v1710_v28, %v731_v43  }
 0x2ae   : >> { %v1444_v46 = vpop.f32.mrf.mxu0 }
 0x2af   : >> { %v2136_v45 = vmov %v1908_v28  ;;  %v1092_v46 = vld [vmem:[%s2126_s12] sm:$0x1] (%p610_p11) }
 0x2b0   : >> { %v1709_v28 = vmov %v2136_v45   ;;  %v733_v61 = vpack.c.bf16 (%p610_p11), %v2136_v45, %v2136_v45 }
 0x2b2   : > { %1462 = vmatmul.mubr.bf16.vlgmr.msra.gmra.mxu0 %v733_v61 }
 0x2b3   : > { %1501 = vmatprep.mubr.msk.bf16.mxu0 %vm1717_vm1, %v1716_v1  ;;  %1486 = vmatpush3.bf16.msra.mxu0 %v1620_v0 }
 0x2b4   : > { %1487 = vmatprep.subr.bf16.mxu0 %v1716_v1 }
 0x2b7   : > { %1488 = vmatpush3.bf16.msra.mxu0 %v1621_v2 }
 0x2b8   : > { %1489 = vmatprep.subr.bf16.mxu0 %v1716_v1 }
 0x2bb   : > { %1490 = vmatpush3.bf16.msra.mxu0 %v1622_v3 }
 0x2bc   : > { %1491 = vmatprep.subr.bf16.mxu0 %v1716_v1 }
 0x2bf   : > { %1492 = vmatpush3.bf16.msra.mxu0 %v1623_v12 }
 0x2c0   : > { %1493 = vmatprep.subr.bf16.mxu0 %v1716_v1 }
 0x2c3   : > { %1494 = vmatpush3.bf16.msra.mxu0 %v1624_v13 }
 0x2c4   : > { %1495 = vmatprep.subr.bf16.mxu0 %v1716_v1 }
 0x2c7   : > { %1496 = vmatpush3.bf16.msra.mxu0 %v1625_v14 }
 0x2c8   : > { %1497 = vmatprep.subr.bf16.mxu0 %v1716_v1 }
 0x2cb   : > { %1498 = vmatpush3.bf16.msra.mxu0 %v1626_v15 }
 0x2cc   : > { %1499 = vmatprep.subr.bf16.mxu0 %v1716_v1 }
 0x2cf   : > { %1500 = vmatpush3.bf16.msra.mxu0 %v1627_v16 }
 0x372   : > { %v841_v5 = vpop.f32.mrf.mxu0 }
 0x373   : > { %v842_v6 = vadd.f32 %v1305_v4, %v841_v5 }
 0x374   : > { %v1463_v7 = vpop.f32.mrf.mxu0 }
 0x375   : > { %v847_v8 = vadd.f32 %v842_v6, %v2136_v45 }
 0x376   : > { %v844_v9 = vpop.f32.mrf.mxu0 }
 0x377   : > { %v848_v10 = vpack.c.bf16 %v847_v8, %v847_v8 }
 0x378   : > { %v1464_v11 = vpop.f32.mrf.mxu0 }
 0x379   : > { %1482 = vmatmul.mubr.bf16.vlgmr.msra.gmra.mxu1 %v848_v10 }
 0x37a   : > { %1521 = vmatprep.mubr.msk.bf16.mxu1 %vm1717_vm1, %v1716_v1  ;;  %1506 = vmatpush3.bf16.msra.mxu1 %v1628_v17 }
 0x37b   : > { %1507 = vmatprep.subr.bf16.mxu1 %v1716_v1 }
 0x37e   : > { %1508 = vmatpush3.bf16.msra.mxu1 %v1629_v18 }
 0x37f   : > { %1509 = vmatprep.subr.bf16.mxu1 %v1716_v1 }
 0x382   : > { %1510 = vmatpush3.bf16.msra.mxu1 %v1630_v19 }
 0x383   : > { %1511 = vmatprep.subr.bf16.mxu1 %v1716_v1 }
 0x386   : > { %1512 = vmatpush3.bf16.msra.mxu1 %v1631_v34 }
 0x387   : > { %1513 = vmatprep.subr.bf16.mxu1 %v1716_v1 }
 0x38a   : > { %1514 = vmatpush3.bf16.msra.mxu1 %v1632_v35 }
 0x38b   : > { %1515 = vmatprep.subr.bf16.mxu1 %v1716_v1 }
 0x38e   : > { %1516 = vmatpush3.bf16.msra.mxu1 %v1633_v36 }
 0x38f   : > { %1517 = vmatprep.subr.bf16.mxu1 %v1716_v1 }
 0x392   : > { %1518 = vmatpush3.bf16.msra.mxu1 %v1634_v37 }
 0x393   : > { %1519 = vmatprep.subr.bf16.mxu1 %v1716_v1 }
 0x396   : > { %1520 = vmatpush3.bf16.msra.mxu1 %v1635_v38 }
 0x439   : > { %v954_v21 = vpop.f32.mrf.mxu1 }
 0x43a   : > { %v955_v22 = vadd.f32 %v1314_v20, %v954_v21 }
 0x43b   : > { %v1483_v23 = vpop.f32.mrf.mxu1 }
 0x43c   : > { %v960_v24 = vrot.slane %v955_v22, 4 }
 0x43d   : > { %v957_v25 = vpop.f32.mrf.mxu1 }
 0x43e   : > { %v961_v26 = vadd.f32 %v960_v24, %v955_v22 }
 0x43f   : > { %v1484_v27 = vpop.f32.mrf.mxu1 }
 0x440   : > { %v962_v28 = vrot.slane %v961_v26, 2 }
 0x442   : > { %v963_v29 = vadd.f32 %v962_v28, %v961_v26 }
 0x444   : > { %v964_v30 = vrot.slane %v963_v29, 1 }
 0x446   : > { %v965_v31 = vadd.f32 %v964_v30, %v963_v29 }
 0x448   : > { %v967_v32 = vmul.f32 0.125, %v965_v31 }
 0x44a   : > { %v968_v33 = vpack.c.bf16 %v967_v32, %v967_v32 }
 0x44c   : > { %1502 = vmatmul.mubr.bf16.vlgmr.msra.gmra.mxu0 %v968_v33 }
 0x50c   : > { %v1068_v40 = vpop.f32.mrf.mxu0 }
 0x50d   : > { %v1069_v41 = vadd.f32 %v1068_v40, %v985_v39 }
 0x50e   : > { %v1503_v42 = vpop.f32.mrf.mxu0 }
 0x50f   : > { %1636 = vtanh.f32 %v1069_v41 }
 0x510   : > { %v1071_v43 = vpop.f32.mrf.mxu0 }
 0x512   : > { %v1504_v44 = vpop.f32.mrf.mxu0 }
 0x51c   : > { %v1637_v45 = vpop.eup %1636 }
 0x51d   : > { %v1075_v1 = vpack.c.bf16 %v1637_v45, %v1637_v45 }
 0x51f   : > { %1522 = vmatmul.mubr.bf16.vlgmr.msra.gmra.mxu1 %v1075_v1 }
 0x5df   : > { %v1175_v47 = vpop.f32.mrf.mxu1 }
 0x5e0   : > { %v1176_v48 = vadd.f32 %v1175_v47, %v1092_v46 }
 0x5e1   : > { %v1523_v49 = vpop.f32.mrf.mxu1 }
 0x5e2   : > { %1181 = vst [vmem:[%s1893_s17] sm:$0x1] %v1176_v48 }
 0x5e3   : > { %v1178_v50 = vpop.f32.mrf.mxu1 }
 0x5e4   : > { %1651 = shalt.err (!%p1648_p4)
}
 0x5e5   : > { %s1652_s17 = scalar_lea.hbm %s2070_s21, 16  ;;  %s1656_s16 = scalar_lea.hbm %s2127_s13, 32 }
 0x5e6   : > { %p1653_p7 = scmp.ne.s32.totalorder %s2070_s21, %s1652_s17  ;;  %p1657_p10 = scmp.lt.s32.totalorder %s2070_s21, %s2127_s13 }
 0x5e7   : > { %p1658_p11 = scmp.lt.s32.totalorder %s1656_s16, %s1652_s17 }
 0x5e8   : > { %p1654_p8 = pnand %p1653_p7, %p1829_p5 }
 0x5e9   : > { %p1659_p12 = por %p1658_p11, %p1657_p10 }
 0x5ea   : > { %p1655_p9 = pneg %p1654_p8 }
 0x5ec   : > { %p1660_p13 = pnand %p1659_p12, %p1655_p9 }
 0x5ee   : > { %1663 = shalt.err (!%p1660_p13)
}
 0x5ef   : > { %1525 = dma.vmem_to_hbm [thread:$0]  (%p1829_p5), %s2072_s15, 16, %s2070_s21, %s1183_s23   ;;  %v1524_v51 = vpop.f32.mrf.mxu1 }
 0x5f0 PF: > { %p1531_p0 = scmp.ge.s32.totalorder %s1706_s28, 2  ;;  %s1207_s24 = sand.u32 1, %s1694_s25  }
 0x5f1   : > { %s1208_s27 = scalar_lea.sflag [#allocation3], %s1207_s24 }
 0x5f2   : > { %p1528_p1 = pnand %p1531_p0, %p1833_p6 }
 0x5f4   : > { %p1529_p2 = pneg %p1528_p1 }
 0x5f6   : > { %1689 = dma.done.wait (%p1529_p2), %s1208_s27, 16  }
 0x5f7   : > { %1691 = vsyncadd (%p1529_p2), %s1208_s27, 4294967280  ;;  %s2138_s1 = sld [smem:[#allocation5_spill]]  ;;  %p23_p3 = scmp.ge.s32.totalorder %s1816_s14, 4  }
 0x5f8   : > { %s2139_s27 = sld [smem:[#allocation6_spill]]  ;;  %s2140_s25 = smov %s1698_s26 }
 0x5f9   : > { %s2142_s28 = smov %s1816_s14  ;;  %25 = sbr.rel (!%p23_p3) target bundleno = 5 (0x5), region = 129 }
 0x5fd   : > { %s2141_s26 = smov %s2138_s1 }
 0x5fe   :  { %1212 = vsyncpa [#allocation3], 1 }
 0x5ff   :  { %1214 = vsyncpa [#allocation3 + $0x1], 1 }

</bundles_post_ra>
